<compile_context>
chip_gen: v7x
topology: tpu7x:2x2x1
jax: 0.10.0
libtpu: 0.0.40
codegen_flags: <defaults>
</compile_context>

<pallas_src>
import math

import jax
import jax.numpy as jnp
from jax.experimental import pallas as pl
from jax.experimental.pallas import tpu as pltpu


# ----------------------- problem sizes (small, deterministic) ----------------
B = 2         # batch
S = 8         # sequence length
D = 32        # d_model
H = 4         # heads
D_K = D // H  # per-head dim


# ----------------------------- Pallas kernel ---------------------------------
def mha_kernel(x_ref, wqkv_ref, bqkv_ref, wo_ref, bo_ref, o_ref):
    """Fused MHA, single invocation (no grid).

    Refs (whole arrays, resident in VMEM):
      x_ref    : (B*S, 3*D)   rows = [q | k | v] activations concatenated on lanes
      wqkv_ref : (3*D, 3*D)   block-diag [Wq^T * 1/sqrt(d_k) ; Wk^T ; Wv^T]
      bqkv_ref : (1, 3*D)     [bq * 1/sqrt(d_k) | bk | bv]
      wo_ref   : (D, D)       Wo^T
      bo_ref   : (1, D)
      o_ref    : (B*S, D)
    """
    # ---- fused Q/K/V projection: ONE lane-dense MXU matmul (16,96)@(96,96) ----
    qkv = jnp.dot(x_ref[...], wqkv_ref[...], preferred_element_type=jnp.float32)
    qkv = qkv + bqkv_ref[...]                                   # (B*S, 3*D)

    # ---- gather per-(batch, head) tiles: (B*H, S, D_K), via static slices ----
    def heads(col0):
        return jnp.stack(
            [qkv[b * S:(b + 1) * S, col0 + h * D_K: col0 + (h + 1) * D_K]
             for b in range(B) for h in range(H)],
            axis=0)

    q_h = heads(0)          # 1/sqrt(d_k) already folded into Wq / bq
    k_h = heads(D)
    v_h = heads(2 * D)

    # ---- scores + softmax, one dot_general batched over B*H heads ----
    s = jnp.einsum("nqd,nkd->nqk", q_h, k_h,
                   preferred_element_type=jnp.float32)          # (B*H, S, S)
    s = s - jnp.max(s, axis=-1, keepdims=True)
    e = jnp.exp(s)
    p = e / jnp.sum(e, axis=-1, keepdims=True)                  # exact softmax
    # TODO(synk): training-mode dropout (p=0.1) on attention probs not implemented.

    ctx = jnp.einsum("nqk,nkd->nqd", p, v_h,
                     preferred_element_type=jnp.float32)        # (B*H, S, D_K)

    # ---- merge heads back onto lanes: (B*S, H*D_K) = (16, 32) ----
    rows = [jnp.concatenate([ctx[b * H + h] for h in range(H)], axis=-1)
            for b in range(B)]                                  # each (S, D)
    ctx2 = jnp.concatenate(rows, axis=0)                        # (B*S, D)

    # ---- output projection: ONE (16,32)@(32,32) matmul + bias ----
    o_ref[...] = (jnp.dot(ctx2, wo_ref[...], preferred_element_type=jnp.float32)
                  + bo_ref[...])


# ------------------------------- wrapper --------------------------------------
@jax.jit
def multi_head_attention(q, k, v, wq, bq, wk, bk, wv, bv, wo, bo):
    scale = 1.0 / math.sqrt(D_K)

    # --- trace-time packing: all transposition / fusion happens outside the kernel ---
    # activations: concat q|k|v on the feature axis, flatten batch*seq on rows.
    x_cat = jnp.concatenate([q, k, v], axis=-1).reshape(B * S, 3 * D)     # (16, 96)

    # block-diagonal fused projection weight (PyTorch nn.Linear weight is (out,in)).
    w_qkv = jnp.zeros((3 * D, 3 * D), jnp.float32)
    w_qkv = w_qkv.at[0:D, 0:D].set(wq.T * scale)     # fold 1/sqrt(d_k) into Q
    w_qkv = w_qkv.at[D:2 * D, D:2 * D].set(wk.T)
    w_qkv = w_qkv.at[2 * D:, 2 * D:].set(wv.T)       # (96, 96)

    b_qkv = jnp.concatenate([bq * scale, bk, bv]).reshape(1, 3 * D)       # (1, 96)
    wo_t = wo.T                                                           # (32, 32)
    bo_row = bo.reshape(1, D)                                             # (1, 32)

    out_flat = pl.pallas_call(
        mha_kernel,
        out_shape=jax.ShapeDtypeStruct((B * S, D), jnp.float32),
        in_specs=[pl.BlockSpec(memory_space=pltpu.MemorySpace.VMEM)
                  for _ in range(5)],
        out_specs=pl.BlockSpec(memory_space=pltpu.MemorySpace.VMEM),
    )(x_cat, w_qkv, b_qkv, wo_t, bo_row)

    return out_flat.reshape(B, S, D)


# -------------------------- pure-JAX reference --------------------------------
def mha_reference(q, k, v, wq, bq, wk, bk, wv, bv, wo, bo):
    def linear(x, w, b):
        return jnp.einsum("bsd,od->bso", x, w) + b[None, None, :]

    Q = linear(q, wq, bq).reshape(B, S, H, D_K).transpose(0, 2, 1, 3)
    K = linear(k, wk, bk).reshape(B, S, H, D_K).transpose(0, 2, 1, 3)
    V = linear(v, wv, bv).reshape(B, S, H, D_K).transpose(0, 2, 1, 3)

    scores = jnp.einsum("bhqd,bhkd->bhqk", Q, K) / math.sqrt(D_K)
    probs = jax.nn.softmax(scores, axis=-1)
    out = jnp.einsum("bhqk,bhkd->bhqd", probs, V)
    concat = out.transpose(0, 2, 1, 3).reshape(B, S, D)
    return jnp.einsum("bsd,od->bso", concat, wo) + bo[None, None, :]


# --------------------------------- main ----------------------------------------
if __name__ == "__main__":
    key = jax.random.PRNGKey(0)
    keys = jax.random.split(key, 12)

    # deterministic "nn.Linear"-style init: U(-1/sqrt(in), 1/sqrt(in))
    bound = 1.0 / math.sqrt(D)

    def uw(k):  # weight (out, in)
        return jax.random.uniform(k, (D, D), jnp.float32, -bound, bound)

    def ub(k):  # bias (D,)
        return jax.random.uniform(k, (D,), jnp.float32, -bound, bound)

    wq, bq = uw(keys[0]), ub(keys[1])
    wk, bk = uw(keys[2]), ub(keys[3])
    wv, bv = uw(keys[4]), ub(keys[5])
    wo, bo = uw(keys[6]), ub(keys[7])

    q = jax.random.normal(keys[8], (B, S, D), jnp.float32)
    k = jax.random.normal(keys[9], (B, S, D), jnp.float32)
    v = jax.random.normal(keys[10], (B, S, D), jnp.float32)

    out = multi_head_attention(q, k, v, wq, bq, wk, bk, wv, bv, wo, bo)
    out = jax.block_until_ready(out)

    ref = mha_reference(q, k, v, wq, bq, wk, bk, wv, bv, wo, bo)
    assert out.shape == (B, S, D)
    # tolerance covers MXU vs XLA matmul accumulation-order / precision differences
    assert jnp.allclose(out, ref, atol=1e-3, rtol=1e-3), "mismatch vs JAX reference"

    print("KERNEL_OK")
</pallas_src>

<mosaic_0001>
module attributes {stable_mosaic.version = 11 : i64} {
  func.func @mha_kernel(%arg0: memref<16x96xf32, #tpu.memory_space<vmem>>, %arg1: memref<96x96xf32, #tpu.memory_space<vmem>>, %arg2: memref<1x96xf32, #tpu.memory_space<vmem>>, %arg3: memref<32x32xf32, #tpu.memory_space<vmem>>, %arg4: memref<1x32xf32, #tpu.memory_space<vmem>>, %arg5: memref<16x32xf32, #tpu.memory_space<vmem>>) attributes {dimension_semantics = [], scalar_prefetch = 0 : i64, scratch_operands = 0 : i64, tpu.core_type = #tpu.core_type<tc>} {
    %c0 = arith.constant 0 : index
    %c0_0 = arith.constant 0 : index
    %0 = vector.load %arg0[%c0, %c0_0] : memref<16x96xf32, #tpu.memory_space<vmem>>, vector<16x96xf32>
    %c0_1 = arith.constant 0 : index
    %c0_2 = arith.constant 0 : index
    %1 = vector.load %arg1[%c0_1, %c0_2] : memref<96x96xf32, #tpu.memory_space<vmem>>, vector<96x96xf32>
    %cst = arith.constant dense<0.000000e+00> : vector<16x96xf32>
    %2 = tpu.matmul %0, %1, %cst {dimension_numbers = #tpu.dot_dimension_numbers<[1], [0], [0], [1], [0, 0, 1, 1], [], []>} : vector<16x96xf32>, vector<96x96xf32>, vector<16x96xf32> -> vector<16x96xf32>
    %c0_3 = arith.constant 0 : index
    %c0_4 = arith.constant 0 : index
    %3 = vector.load %arg2[%c0_3, %c0_4] : memref<1x96xf32, #tpu.memory_space<vmem>>, vector<1x96xf32>
    %4 = vector.broadcast %3 : vector<1x96xf32> to vector<16x96xf32>
    %5 = arith.addf %2, %4 : vector<16x96xf32>
    %6 = vector.extract_strided_slice %5 {offsets = [0, 0], sizes = [8, 8], strides = [1, 1]} : vector<16x96xf32> to vector<8x8xf32>
    %7 = vector.extract_strided_slice %5 {offsets = [0, 8], sizes = [8, 8], strides = [1, 1]} : vector<16x96xf32> to vector<8x8xf32>
    %8 = vector.extract_strided_slice %5 {offsets = [0, 16], sizes = [8, 8], strides = [1, 1]} : vector<16x96xf32> to vector<8x8xf32>
    %9 = vector.extract_strided_slice %5 {offsets = [0, 24], sizes = [8, 8], strides = [1, 1]} : vector<16x96xf32> to vector<8x8xf32>
    %10 = vector.extract_strided_slice %5 {offsets = [8, 0], sizes = [8, 8], strides = [1, 1]} : vector<16x96xf32> to vector<8x8xf32>
    %11 = vector.extract_strided_slice %5 {offsets = [8, 8], sizes = [8, 8], strides = [1, 1]} : vector<16x96xf32> to vector<8x8xf32>
    %12 = vector.extract_strided_slice %5 {offsets = [8, 16], sizes = [8, 8], strides = [1, 1]} : vector<16x96xf32> to vector<8x8xf32>
    %13 = vector.extract_strided_slice %5 {offsets = [8, 24], sizes = [8, 8], strides = [1, 1]} : vector<16x96xf32> to vector<8x8xf32>
    %14 = vector.shape_cast %6 : vector<8x8xf32> to vector<1x8x8xf32>
    %15 = vector.shape_cast %7 : vector<8x8xf32> to vector<1x8x8xf32>
    %16 = vector.shape_cast %8 : vector<8x8xf32> to vector<1x8x8xf32>
    %17 = vector.shape_cast %9 : vector<8x8xf32> to vector<1x8x8xf32>
    %18 = vector.shape_cast %10 : vector<8x8xf32> to vector<1x8x8xf32>
    %19 = vector.shape_cast %11 : vector<8x8xf32> to vector<1x8x8xf32>
    %20 = vector.shape_cast %12 : vector<8x8xf32> to vector<1x8x8xf32>
    %21 = vector.shape_cast %13 : vector<8x8xf32> to vector<1x8x8xf32>
    %22 = tpu.concatenate %14, %15, %16, %17, %18, %19, %20, %21 in 0 : vector<1x8x8xf32>, vector<1x8x8xf32>, vector<1x8x8xf32>, vector<1x8x8xf32>, vector<1x8x8xf32>, vector<1x8x8xf32>, vector<1x8x8xf32>, vector<1x8x8xf32> -> vector<8x8x8xf32>
    %23 = vector.extract_strided_slice %5 {offsets = [0, 32], sizes = [8, 8], strides = [1, 1]} : vector<16x96xf32> to vector<8x8xf32>
    %24 = vector.extract_strided_slice %5 {offsets = [0, 40], sizes = [8, 8], strides = [1, 1]} : vector<16x96xf32> to vector<8x8xf32>
    %25 = vector.extract_strided_slice %5 {offsets = [0, 48], sizes = [8, 8], strides = [1, 1]} : vector<16x96xf32> to vector<8x8xf32>
    %26 = vector.extract_strided_slice %5 {offsets = [0, 56], sizes = [8, 8], strides = [1, 1]} : vector<16x96xf32> to vector<8x8xf32>
    %27 = vector.extract_strided_slice %5 {offsets = [8, 32], sizes = [8, 8], strides = [1, 1]} : vector<16x96xf32> to vector<8x8xf32>
    %28 = vector.extract_strided_slice %5 {offsets = [8, 40], sizes = [8, 8], strides = [1, 1]} : vector<16x96xf32> to vector<8x8xf32>
    %29 = vector.extract_strided_slice %5 {offsets = [8, 48], sizes = [8, 8], strides = [1, 1]} : vector<16x96xf32> to vector<8x8xf32>
    %30 = vector.extract_strided_slice %5 {offsets = [8, 56], sizes = [8, 8], strides = [1, 1]} : vector<16x96xf32> to vector<8x8xf32>
    %31 = vector.shape_cast %23 : vector<8x8xf32> to vector<1x8x8xf32>
    %32 = vector.shape_cast %24 : vector<8x8xf32> to vector<1x8x8xf32>
    %33 = vector.shape_cast %25 : vector<8x8xf32> to vector<1x8x8xf32>
    %34 = vector.shape_cast %26 : vector<8x8xf32> to vector<1x8x8xf32>
    %35 = vector.shape_cast %27 : vector<8x8xf32> to vector<1x8x8xf32>
    %36 = vector.shape_cast %28 : vector<8x8xf32> to vector<1x8x8xf32>
    %37 = vector.shape_cast %29 : vector<8x8xf32> to vector<1x8x8xf32>
    %38 = vector.shape_cast %30 : vector<8x8xf32> to vector<1x8x8xf32>
    %39 = tpu.concatenate %31, %32, %33, %34, %35, %36, %37, %38 in 0 : vector<1x8x8xf32>, vector<1x8x8xf32>, vector<1x8x8xf32>, vector<1x8x8xf32>, vector<1x8x8xf32>, vector<1x8x8xf32>, vector<1x8x8xf32>, vector<1x8x8xf32> -> vector<8x8x8xf32>
    %40 = vector.extract_strided_slice %5 {offsets = [0, 64], sizes = [8, 8], strides = [1, 1]} : vector<16x96xf32> to vector<8x8xf32>
    %41 = vector.extract_strided_slice %5 {offsets = [0, 72], sizes = [8, 8], strides = [1, 1]} : vector<16x96xf32> to vector<8x8xf32>
    %42 = vector.extract_strided_slice %5 {offsets = [0, 80], sizes = [8, 8], strides = [1, 1]} : vector<16x96xf32> to vector<8x8xf32>
    %43 = vector.extract_strided_slice %5 {offsets = [0, 88], sizes = [8, 8], strides = [1, 1]} : vector<16x96xf32> to vector<8x8xf32>
    %44 = vector.extract_strided_slice %5 {offsets = [8, 64], sizes = [8, 8], strides = [1, 1]} : vector<16x96xf32> to vector<8x8xf32>
    %45 = vector.extract_strided_slice %5 {offsets = [8, 72], sizes = [8, 8], strides = [1, 1]} : vector<16x96xf32> to vector<8x8xf32>
    %46 = vector.extract_strided_slice %5 {offsets = [8, 80], sizes = [8, 8], strides = [1, 1]} : vector<16x96xf32> to vector<8x8xf32>
    %47 = vector.extract_strided_slice %5 {offsets = [8, 88], sizes = [8, 8], strides = [1, 1]} : vector<16x96xf32> to vector<8x8xf32>
    %48 = vector.shape_cast %40 : vector<8x8xf32> to vector<1x8x8xf32>
    %49 = vector.shape_cast %41 : vector<8x8xf32> to vector<1x8x8xf32>
    %50 = vector.shape_cast %42 : vector<8x8xf32> to vector<1x8x8xf32>
    %51 = vector.shape_cast %43 : vector<8x8xf32> to vector<1x8x8xf32>
    %52 = vector.shape_cast %44 : vector<8x8xf32> to vector<1x8x8xf32>
    %53 = vector.shape_cast %45 : vector<8x8xf32> to vector<1x8x8xf32>
    %54 = vector.shape_cast %46 : vector<8x8xf32> to vector<1x8x8xf32>
    %55 = vector.shape_cast %47 : vector<8x8xf32> to vector<1x8x8xf32>
    %56 = tpu.concatenate %48, %49, %50, %51, %52, %53, %54, %55 in 0 : vector<1x8x8xf32>, vector<1x8x8xf32>, vector<1x8x8xf32>, vector<1x8x8xf32>, vector<1x8x8xf32>, vector<1x8x8xf32>, vector<1x8x8xf32>, vector<1x8x8xf32> -> vector<8x8x8xf32>
    "tpu.trace_start"() <{level = 10 : i32, message = "nqd,nkd->nqk"}> : () -> ()
    %cst_5 = arith.constant dense<0.000000e+00> : vector<8x8x8xf32>
    %57 = tpu.matmul %22, %39, %cst_5 {dimension_numbers = #tpu.dot_dimension_numbers<[2], [2], [1], [1], [0, 0, 0, 1, 1, 1], [0], [0]>} : vector<8x8x8xf32>, vector<8x8x8xf32>, vector<8x8x8xf32> -> vector<8x8x8xf32>
    "tpu.trace_stop"() : () -> ()
    %cst_6 = arith.constant dense<0xFF800000> : vector<8x8xf32>
    %58 = vector.multi_reduction <maximumf>, %57, %cst_6 [2] : vector<8x8x8xf32> to vector<8x8xf32>
    %59 = vector.shape_cast %58 : vector<8x8xf32> to vector<8x8x1xf32>
    %60 = vector.broadcast %59 : vector<8x8x1xf32> to vector<8x8x8xf32>
    %61 = arith.subf %57, %60 : vector<8x8x8xf32>
    %62 = math.exp %61 : vector<8x8x8xf32>
    %cst_7 = arith.constant dense<0.000000e+00> : vector<8x8xf32>
    %63 = vector.multi_reduction <add>, %62, %cst_7 [2] : vector<8x8x8xf32> to vector<8x8xf32>
    %64 = vector.shape_cast %63 : vector<8x8xf32> to vector<8x8x1xf32>
    %65 = vector.broadcast %64 : vector<8x8x1xf32> to vector<8x8x8xf32>
    %66 = arith.divf %62, %65 : vector<8x8x8xf32>
    "tpu.trace_start"() <{level = 10 : i32, message = "nqk,nkd->nqd"}> : () -> ()
    %cst_8 = arith.constant dense<0.000000e+00> : vector<8x8x8xf32>
    %67 = tpu.matmul %66, %56, %cst_8 {dimension_numbers = #tpu.dot_dimension_numbers<[2], [1], [1], [2], [0, 0, 0, 1, 1, 2], [0], [0]>} : vector<8x8x8xf32>, vector<8x8x8xf32>, vector<8x8x8xf32> -> vector<8x8x8xf32>
    "tpu.trace_stop"() : () -> ()
    %68 = vector.extract_strided_slice %67 {offsets = [0, 0, 0], sizes = [1, 8, 8], strides = [1, 1, 1]} : vector<8x8x8xf32> to vector<1x8x8xf32>
    %69 = vector.shape_cast %68 : vector<1x8x8xf32> to vector<8x8xf32>
    %70 = vector.extract_strided_slice %67 {offsets = [1, 0, 0], sizes = [1, 8, 8], strides = [1, 1, 1]} : vector<8x8x8xf32> to vector<1x8x8xf32>
    %71 = vector.shape_cast %70 : vector<1x8x8xf32> to vector<8x8xf32>
    %72 = vector.extract_strided_slice %67 {offsets = [2, 0, 0], sizes = [1, 8, 8], strides = [1, 1, 1]} : vector<8x8x8xf32> to vector<1x8x8xf32>
    %73 = vector.shape_cast %72 : vector<1x8x8xf32> to vector<8x8xf32>
    %74 = vector.extract_strided_slice %67 {offsets = [3, 0, 0], sizes = [1, 8, 8], strides = [1, 1, 1]} : vector<8x8x8xf32> to vector<1x8x8xf32>
    %75 = vector.shape_cast %74 : vector<1x8x8xf32> to vector<8x8xf32>
    %76 = tpu.concatenate %69, %71, %73, %75 in 1 : vector<8x8xf32>, vector<8x8xf32>, vector<8x8xf32>, vector<8x8xf32> -> vector<8x32xf32>
    %77 = vector.extract_strided_slice %67 {offsets = [4, 0, 0], sizes = [1, 8, 8], strides = [1, 1, 1]} : vector<8x8x8xf32> to vector<1x8x8xf32>
    %78 = vector.shape_cast %77 : vector<1x8x8xf32> to vector<8x8xf32>
    %79 = vector.extract_strided_slice %67 {offsets = [5, 0, 0], sizes = [1, 8, 8], strides = [1, 1, 1]} : vector<8x8x8xf32> to vector<1x8x8xf32>
    %80 = vector.shape_cast %79 : vector<1x8x8xf32> to vector<8x8xf32>
    %81 = vector.extract_strided_slice %67 {offsets = [6, 0, 0], sizes = [1, 8, 8], strides = [1, 1, 1]} : vector<8x8x8xf32> to vector<1x8x8xf32>
    %82 = vector.shape_cast %81 : vector<1x8x8xf32> to vector<8x8xf32>
    %83 = vector.extract_strided_slice %67 {offsets = [7, 0, 0], sizes = [1, 8, 8], strides = [1, 1, 1]} : vector<8x8x8xf32> to vector<1x8x8xf32>
    %84 = vector.shape_cast %83 : vector<1x8x8xf32> to vector<8x8xf32>
    %85 = tpu.concatenate %78, %80, %82, %84 in 1 : vector<8x8xf32>, vector<8x8xf32>, vector<8x8xf32>, vector<8x8xf32> -> vector<8x32xf32>
    %86 = tpu.concatenate %76, %85 in 0 : vector<8x32xf32>, vector<8x32xf32> -> vector<16x32xf32>
    %c0_9 = arith.constant 0 : index
    %c0_10 = arith.constant 0 : index
    %87 = vector.load %arg3[%c0_9, %c0_10] : memref<32x32xf32, #tpu.memory_space<vmem>>, vector<32x32xf32>
    %cst_11 = arith.constant dense<0.000000e+00> : vector<16x32xf32>
    %88 = tpu.matmul %86, %87, %cst_11 {dimension_numbers = #tpu.dot_dimension_numbers<[1], [0], [0], [1], [0, 0, 1, 1], [], []>} : vector<16x32xf32>, vector<32x32xf32>, vector<16x32xf32> -> vector<16x32xf32>
    %c0_12 = arith.constant 0 : index
    %c0_13 = arith.constant 0 : index
    %89 = vector.load %arg4[%c0_12, %c0_13] : memref<1x32xf32, #tpu.memory_space<vmem>>, vector<1x32xf32>
    %90 = vector.broadcast %89 : vector<1x32xf32> to vector<16x32xf32>
    %91 = arith.addf %88, %90 : vector<16x32xf32>
    %c0_14 = arith.constant 0 : index
    %c0_15 = arith.constant 0 : index
    %92 = vector.load %arg5[%c0_14, %c0_15] : memref<16x32xf32, #tpu.memory_space<vmem>>, vector<16x32xf32>
    tpu.vector_store %arg5[%c0_14, %c0_15], %91 {strides = array<i32>} : memref<16x32xf32, #tpu.memory_space<vmem>>, vector<16x32xf32>,
    return
  }
}

</mosaic_0001>

<bundles_post_ra>
// kernel: multi_head_attention.1
= control target key start
LH: loop header
LB: loop body
LE: loop exit
PB: predicated region body
PF: predicated region fallthrough
CT: control target
= control target key end

     0   :  { %vm42_vm0 = vcmask 785408   ;;  %s2169_s0 = inlined_call_operand.vmem [shape: f32[16,96], index: 0, kind: input, shape index: {}]   ;;  %s2170_s1 = inlined_call_operand.vmem [shape: f32[96,96], index: 1, kind: input, shape index: {}]   ;;  %s2171_s2 = inlined_call_operand.vmem [shape: f32[1,96], index: 2, kind: input, shape index: {}]   ;;  %s2172_s3 = inlined_call_operand.vmem [shape: f32[32,32], index: 3, kind: input, shape index: {}]   ;;  %s2173_s4 = inlined_call_operand.vmem [shape: f32[1,32], index: 4, kind: input, shape index: {}]   ;;  %s2174_s5 = inlined_call_operand.hbm [shape: f32[16,32], index: 5, kind: output, shape index: {}]  }
   0x1   :  { %v23_v0 = vld [vmem:[%s2170_s1] sm:$0xff]  ;;  %v24_v1 = vld [vmem:[%s2170_s1 + $0x8] sm:$0xff]  ;;  %v25_v2 = vld [vmem:[%s2170_s1 + $0x10] sm:$0xff] }
   0x2   :  { %v1786_v3 = vpack.c.bf16 %v24_v1, %v23_v0  ;;  %v26_v4 = vld [vmem:[%s2170_s1 + $0x18] sm:$0xff]  ;;  %v27_v6 = vld [vmem:[%s2170_s1 + $0x20] sm:$0xff]  ;;  %v28_v7 = vld [vmem:[%s2170_s1 + $0x28] sm:$0xff] }
   0x3   :  { %v1790_v5 = vpack.c.bf16 %v26_v4, %v25_v2  ;;  %v21_v8 = vld [vmem:[%s2169_s0] sm:$0xff] }
   0x4   :  { %1787 = vmatprep.subr.bf16.mxu0 %v1786_v3 }
   0x5   :  { %1789 = vmatpush3.bf16.msra.mxu0 %v1786_v3 }
   0x6   :  { %10 = vsyncpa [#allocation3], 0  ;;  %1791 = vmatprep.subr.bf16.mxu0 %v1790_v5  ;;  %v1794_v9 = vpack.c.bf16 %v28_v7, %v27_v6  ;;  %1692 = vmatprep.mubr.msk.f32.mxu0 %vm42_vm0, %v21_v8  ;;  %v29_v10 = vld [vmem:[%s2170_s1 + $0x30] sm:$0xff]  ;;  %v30_v11 = vld [vmem:[%s2170_s1 + $0x38] sm:$0xff]  ;;  %v1886_v22 = vmov 0.0   ;;  %s1888_s23 = smov 120  }
   0x7   :  { %v1798_v12 = vpack.c.bf16 %v30_v11, %v29_v10  ;;  %v31_v13 = vld [vmem:[%s2170_s1 + $0x40] sm:$0xff]  ;;  %v32_v14 = vld [vmem:[%s2170_s1 + $0x48] sm:$0xff]  ;;  %v33_v16 = vld [vmem:[%s2170_s1 + $0x50] sm:$0xff]  ;;  %1695 = vmatprep.subr.mxu1 %v1886_v22  ;;  %vm1889_vm1 = vmmov 0   ;;  %vm140_vm2 = vcmask 64512   ;;  %s1892_s24 = smov 64  }
   0x8   :  { %v1802_v15 = vpack.c.bf16 %v32_v14, %v31_v13  ;;  %v34_v17 = vld [vmem:[%s2170_s1 + $0x58] sm:$0xff]  ;;  %v22_v19 = vld [vmem:[%s2169_s0 + $0x8] sm:$0xff]  ;;  %v1586_v20 = vld [vmem:[%s2171_s2] ss:$0 sm:$0xff]  ;;  %s1887_s1 = smov 104   ;;  %1697 = vmatprep.mubr.msk.f32.mxu1 %vm1889_vm1, %v1886_v22  ;;  %s1890_s0 = smov 112  }
   0x9   :  { %1793 = vmatpush3.bf16.msra.mxu0 %v1790_v5  ;;  %v1806_v18 = vpack.c.bf16 %v34_v17, %v33_v16  ;;  %s1891_s2 = smov 96   ;;  %s1893_s25 = smov 8   ;;  %vm1456_vm3 = vcmask 130048   ;;  %vm1458_vm4 = vcmask 195584   ;;  %vm1486_vm5 = vcmask 261120  }
   0xa   :  { %1795 = vmatprep.subr.bf16.mxu0 %v1794_v9  ;;  %s1894_s30 = smov 16   ;;  %s1895_s10 = smov 24  }
   0xb   :  { %s1896_s12 = smov [#allocation2]  }
   0xc   :  { %s1575_s13 = sshll.u32 %s1896_s12, 4  ;;  %s1576_s13 = int_to_ptr.vmem [resolvable:$true] %s1575_s13 }
   0xd   :  { %1797 = vmatpush3.bf16.msra.mxu0 %v1794_v9  ;;  %s1862_s14 = scalar_lea.vmem %s1576_s13, 256  ;;  %p1867_p1 = scmp.lt.s32.totalorder %s1576_s13, %s1576_s13 }
   0xe   :  { %1799 = vmatprep.subr.bf16.mxu0 %v1798_v12  ;;  %p1863_p0 = scmp.ne.s32.totalorder %s1576_s13, %s1862_s14  ;;  %p1868_p2 = scmp.lt.s32.totalorder %s1862_s14, %s1862_s14 }
  0x10   :  { %p1869_p3 = por %p1868_p2, %p1867_p1 }
  0x11   :  { %1801 = vmatpush3.bf16.msra.mxu0 %v1798_v12 }
  0x12   :  { %1803 = vmatprep.subr.bf16.mxu0 %v1802_v15  ;;  %p1870_p4 = pnand %p1869_p3, %p1863_p0 }
  0x15   :  { %1805 = vmatpush3.bf16.msra.mxu0 %v1802_v15 }
  0x16   :  { %1807 = vmatprep.subr.bf16.mxu0 %v1806_v18 }
  0x19   :  { %1809 = vmatpush3.bf16.msra.mxu0 %v1806_v18 }
  0x1a   :  { %1735 = vmatprep.subr.mxu0 %v1886_v22 }
  0x1c   :  { %1693 = vmatmul.mubr.msk.f32.vlgmr.msra.gmra.mrb[0].mxu0 %vm42_vm0, %v22_v19 }
  0x1d   :  { %1737 = vmatprep.mubr.msk.f32.mxu0 %vm1889_vm1, %v1886_v22 }
  0xef   :  { %v1694_v21 = vpop.f32.mrb[0].mxu0 }
  0xf0   :  { %v115_v23 = vpop.f32.mrb[1].mxu0  ;;  %v1985_v25 = vadd.f32 %v1694_v21, %v1586_v20 }
  0xf1   :  { %v1977_v24 = vadd.f32 %v1586_v20, %v115_v23 }
  0xf3   :  { %129 = vrot.lane.b32.xlu1 %v1977_v24, %s1887_s1  ;;  %125 = vrot.lane.b32.xlu0 %v1977_v24, %s1888_s23 }
  0xf7   :  { %132 = vrot.lane.b32.xlu1 %v1985_v25, %s1888_s23  ;;  %127 = vrot.lane.b32.xlu0 %v1977_v24, %s1890_s0 }
  0xfb   :  { %136 = vrot.lane.b32.xlu1 %v1985_v25, %s1887_s1  ;;  %134 = vrot.lane.b32.xlu0 %v1985_v25, %s1890_s0 }
  0xff   :  { %138 = vrot.lane.b32.xlu0 %v1977_v24, %s1891_s2 }
 0x165   :  { %v1992_v26 = vpop.permute.xlu1 %129  ;;  %v1994_v27 = vpop.permute.xlu0 %125 }
 0x166   :  { %215 = vrot.lane.b32.xlu1 %v1994_v27, %s1891_s2 }
 0x169   :  { %v1997_v28 = vpop.permute.xlu0 %127  ;;  %v2001_v29 = vpop.permute.xlu1 %132 }
 0x16a   :  { %367 = vrot.lane.b32.xlu1 %v1992_v26, %s1891_s2  ;;  %291 = vrot.lane.b32.xlu0 %v1997_v28, %s1891_s2 }
 0x16d   :  { %v2003_v30 = vpop.permute.xlu0 %134  ;;  %v2007_v31 = vpop.permute.xlu1 %136 }
 0x16e   :  { %519 = vrot.lane.b32.xlu1 %v2001_v29, %s1891_s2  ;;  %443 = vrot.lane.b32.xlu0 %v1985_v25, %s1891_s2 }
 0x171   :  { %v139_v32 = vpop.permute.xlu0 %138 }
 0x172   :  { %671 = vrot.lane.b32.xlu1 %v2007_v31, %s1891_s2  ;;  %595 = vrot.lane.b32.xlu0 %v2003_v30, %s1891_s2 }
 0x173   :  { %1696 = vmatpush3.xpose.msk.msra.mxu1 %vm140_vm2, %v139_v32 }
 0x174   :  { %1700 = vmatprep.subr.mxu1 %v1886_v22 }
 0x176   :  { %1698 = vmatmul.mubr.msk.f32.vlgmr.msra.gmra.mrb[0].mxu1 %vm140_vm2, %v1977_v24 }
 0x177   :  { %1702 = vmatprep.mubr.msk.f32.mxu1 %vm1889_vm1, %v1886_v22 }
 0x1d8   :  { %v216_v33 = vpop.permute.xlu1 %215 }
 0x1d9   :  { %1701 = vmatpush3.xpose.msk.msra.mxu1 %vm140_vm2, %v216_v33 }
 0x1da   :  { %1705 = vmatprep.subr.mxu1 %v1886_v22 }
 0x1dc   :  { %1703 = vmatmul.mubr.msk.f32.vlgmr.msra.gmra.mrb[2].mxu1 %vm140_vm2, %v1994_v27  ;;  %v292_v34 = vpop.permute.xlu0 %291  ;;  %v368_v35 = vpop.permute.xlu1 %367 }
 0x1dd   :  { %1706 = vmatpush3.xpose.msk.msra.mxu1 %vm140_vm2, %v292_v34  ;;  %1707 = vmatprep.mubr.msk.f32.mxu1 %vm1889_vm1, %v1886_v22 }
 0x1de   :  { %1710 = vmatprep.subr.mxu1 %v1886_v22 }
 0x1e0   :  { %1708 = vmatmul.mubr.msk.f32.vlgmr.msra.gmra.mrb[4].mxu1 %vm140_vm2, %v1997_v28  ;;  %v444_v36 = vpop.permute.xlu0 %443  ;;  %v520_v37 = vpop.permute.xlu1 %519 }
 0x1e1   :  { %1711 = vmatpush3.xpose.msk.msra.mxu1 %vm140_vm2, %v368_v35  ;;  %1712 = vmatprep.mubr.msk.f32.mxu1 %vm1889_vm1, %v1886_v22 }
 0x1e2   :  { %1715 = vmatprep.subr.mxu1 %v1886_v22 }
 0x1e4   :  { %1713 = vmatmul.mubr.msk.f32.vlgmr.msra.gmra.mrb[6].mxu1 %vm140_vm2, %v1992_v26  ;;  %v596_v38 = vpop.permute.xlu0 %595  ;;  %v672_v39 = vpop.permute.xlu1 %671 }
 0x1e5   :  { %1716 = vmatpush3.xpose.msk.msra.mxu1 %vm140_vm2, %v444_v36  ;;  %1717 = vmatprep.mubr.msk.f32.mxu1 %vm1889_vm1, %v1886_v22 }
 0x1e6   :  { %1720 = vmatprep.subr.mxu1 %v1886_v22 }
 0x1e8   :  { %1718 = vmatmul.mubr.msk.f32.vlgmr.msra.gmra.mrb[8].mxu1 %vm140_vm2, %v1985_v25 }
 0x1e9   :  { %1721 = vmatpush3.xpose.msk.msra.mxu1 %vm140_vm2, %v520_v37  ;;  %1722 = vmatprep.mubr.msk.f32.mxu1 %vm1889_vm1, %v1886_v22 }
 0x1ea   :  { %1725 = vmatprep.subr.mxu1 %v1886_v22 }
 0x1ec   :  { %1723 = vmatmul.mubr.msk.f32.vlgmr.msra.gmra.mrb[10].mxu1 %vm140_vm2, %v2001_v29 }
 0x1ed   :  { %1726 = vmatpush3.xpose.msk.msra.mxu1 %vm140_vm2, %v596_v38  ;;  %1727 = vmatprep.mubr.msk.f32.mxu1 %vm1889_vm1, %v1886_v22 }
 0x1ee   :  { %1730 = vmatprep.subr.mxu1 %v1886_v22 }
 0x1f0   :  { %1728 = vmatmul.mubr.msk.f32.vlgmr.msra.gmra.mrb[12].mxu1 %vm140_vm2, %v2003_v30 }
 0x1f1   :  { %1731 = vmatpush3.xpose.msk.msra.mxu1 %vm140_vm2, %v672_v39  ;;  %1732 = vmatprep.mubr.msk.f32.mxu1 %vm1889_vm1, %v1886_v22 }
 0x1f2   :  { %1740 = vmatprep.subr.mxu1 %v1886_v22 }
 0x1f4   :  { %1733 = vmatmul.mubr.msk.f32.vlgmr.msra.gmra.mrb[14].mxu1 %vm140_vm2, %v2007_v31 }
 0x1f5   :  { %1742 = vmatprep.mubr.msk.f32.mxu1 %vm1889_vm1, %v1886_v22 }
 0x249   :  { %v211_v40 = vpop.f32.mrb[0].mxu1 }
 0x24a   :  { %v1699_v41 = vpop.f32.mrb[1].mxu1  ;;  %v747_v42 = vsel %vm140_vm2, %v211_v40, -inf }
 0x24b   :  { %748 = vmax.xlane.f32.xlu0 %v747_v42 }
 0x2af   :  { %v287_v43 = vpop.f32.mrb[2].mxu1 }
 0x2b0   :  { %v1704_v44 = vpop.f32.mrb[3].mxu1  ;;  %v750_v45 = vsel %vm140_vm2, %v287_v43, -inf }
 0x2b1   :  { %751 = vmax.xlane.f32.xlu1 %v750_v45 }
 0x2b3   :  { %v363_v46 = vpop.f32.mrb[4].mxu1 }
 0x2b4   :  { %v1709_v47 = vpop.f32.mrb[5].mxu1  ;;  %v753_v48 = vsel %vm140_vm2, %v363_v46, -inf }
 0x2b5   :  { %754 = vmax.xlane.f32.xlu0 %v753_v48 }
 0x2b7   :  { %v439_v49 = vpop.f32.mrb[6].mxu1 }
 0x2b8   :  { %v1714_v50 = vpop.f32.mrb[7].mxu1  ;;  %v756_v51 = vsel %vm140_vm2, %v439_v49, -inf }
 0x2b9   :  { %757 = vmax.xlane.f32.xlu0 %v756_v51 }
 0x2bb   :  { %v515_v52 = vpop.f32.mrb[8].mxu1 }
 0x2bc   :  { %v1719_v53 = vpop.f32.mrb[9].mxu1  ;;  %v759_v54 = vsel %vm140_vm2, %v515_v52, -inf }
 0x2bd   :  { %760 = vmax.xlane.f32.xlu1 %v759_v54 }
 0x2bf   :  { %v591_v55 = vpop.f32.mrb[10].mxu1 }
 0x2c0   :  { %v1724_v56 = vpop.f32.mrb[11].mxu1  ;;  %v762_v57 = vsel %vm140_vm2, %v591_v55, -inf }
 0x2c1   :  { %763 = vmax.xlane.f32.xlu0 %v762_v57 }
 0x2c3   :  { %v667_v58 = vpop.f32.mrb[12].mxu1 }
 0x2c4   :  { %v1729_v59 = vpop.f32.mrb[13].mxu1  ;;  %v765_v60 = vsel %vm140_vm2, %v667_v58, -inf }
 0x2c5   :  { %766 = vmax.xlane.f32.xlu1 %v765_v60 }
 0x2c7   :  { %v743_v61 = vpop.f32.mrb[14].mxu1 }
 0x2c8   :  { %v1734_v62 = vpop.f32.mrb[15].mxu1  ;;  %v768_v63 = vsel %vm140_vm2, %v743_v61, -inf }
 0x2c9   :  { %769 = vmax.xlane.f32.xlu0 %v768_v63 }
 0x2d6   :  { %835 = vrot.lane.b32.xlu1 %v1977_v24, %s1892_s24 }
 0x2d8   :  { %v749_v0 = vpop.xlane.xlu0 %748 }
 0x2d9   :  { %v771_v1 = vsub.f32 %v211_v40, %v749_v0 }
 0x2da   :  { %987 = vrot.lane.b32.xlu1 %v1997_v28, %s1892_s24 }
 0x2db   :  { %v779_v2 = vmul.f32 1.442695, %v771_v1 }
 0x2dd   :  { %1830 = vpow2.f32 %v779_v2 }
 0x2de   :  { %1063 = vrot.lane.b32.xlu1 %v1992_v26, %s1892_s24 }
 0x2df   :  { %911 = vrot.lane.b32.xlu0 %v1994_v27, %s1892_s24 }
 0x2e2   :  { %1215 = vrot.lane.b32.xlu1 %v2001_v29, %s1892_s24 }
 0x2e3   :  { %1139 = vrot.lane.b32.xlu0 %v1985_v25, %s1892_s24 }
 0x2e7   :  { %v2079_v3 = vpop.eup %1830 }
 0x2e8   :  { %v795_v4 = vsel %vm140_vm2, %v2079_v3, 0.0 }
 0x306   :  { %796 = vadd.xlane.f32.xlu1 %v795_v4 }
 0x33e   :  { %v752_v5 = vpop.xlane.xlu1 %751 }
 0x33f   :  { %v772_v6 = vsub.f32 %v287_v43, %v752_v5 }
 0x341   :  { %v781_v7 = vmul.f32 1.442695, %v772_v6 }
 0x342   :  { %v755_v8 = vpop.xlane.xlu0 %754 }
 0x343   :  { %1832 = vpow2.f32 %v781_v7  ;;  %v773_v9 = vsub.f32 %v363_v46, %v755_v8 }
 0x345   :  { %v783_v10 = vmul.f32 1.442695, %v773_v9 }
 0x346   :  { %v758_v11 = vpop.xlane.xlu0 %757 }
 0x347   :  { %1834 = vpow2.f32 %v783_v10  ;;  %v774_v12 = vsub.f32 %v439_v49, %v758_v11 }
 0x349   :  { %v785_v13 = vmul.f32 1.442695, %v774_v12 }
 0x34a   :  { %v761_v14 = vpop.xlane.xlu1 %760 }
 0x34b   :  { %1836 = vpow2.f32 %v785_v13  ;;  %v775_v15 = vsub.f32 %v515_v52, %v761_v14  ;;  %v1476_v13 = vld [vmem:[%s2172_s3 + $0x8] sm:$0xff] }
 0x34d   :  { %v1833_v16 = vpop.eup %1832  ;;  %v787_v17 = vmul.f32 1.442695, %v775_v15 }
 0x34e   :  { %v764_v18 = vpop.xlane.xlu0 %763  ;;  %v798_v19 = vsel %vm140_vm2, %v1833_v16, 0.0 }
 0x34f   :  { %1838 = vpow2.f32 %v787_v17  ;;  %v776_v20 = vsub.f32 %v591_v55, %v764_v18  ;;  %799 = vadd.xlane.f32.xlu0 %v798_v19  ;;  %v1477_v17 = vld [vmem:[%s2172_s3 + $0x10] sm:$0xff]  ;;  %v1478_v18 = vld [vmem:[%s2172_s3 + $0x18] sm:$0xff] }
 0x351   :  { %v1835_v21 = vpop.eup %1834  ;;  %v789_v23 = vmul.f32 1.442695, %v776_v20  ;;  %v1814_v20 = vpack.c.bf16 %v1478_v18, %v1477_v17 }
 0x352   :  { %v767_v24 = vpop.xlane.xlu1 %766  ;;  %v801_v25 = vsel %vm140_vm2, %v1835_v21, 0.0 }
 0x353   :  { %1840 = vpow2.f32 %v789_v23  ;;  %v777_v26 = vsub.f32 %v667_v58, %v767_v24  ;;  %802 = vadd.xlane.f32.xlu1 %v801_v25 }
 0x355   :  { %v2085_v27 = vpop.eup %1836  ;;  %v791_v28 = vmul.f32 1.442695, %v777_v26 }
 0x356   :  { %v836_v29 = vpop.permute.xlu1 %835  ;;  %v770_v32 = vpop.xlane.xlu0 %769  ;;  %v804_v33 = vsel %vm140_vm2, %v2085_v27, 0.0 }
 0x357   :  { %1842 = vpow2.f32 %v791_v28  ;;  %v778_v34 = vsub.f32 %v743_v61, %v770_v32  ;;  %1736 = vmatpush3.msra.mxu0 %v836_v29  ;;  %805 = vadd.xlane.f32.xlu0 %v804_v33 }
 0x358   :  { %1745 = vmatprep.subr.mxu0 %v1886_v22 }
 0x359   :  { %v1839_v35 = vpop.eup %1838  ;;  %v793_v36 = vmul.f32 1.442695, %v778_v34 }
 0x35a   :  { %v912_v37 = vpop.permute.xlu0 %911  ;;  %v807_v38 = vsel %vm140_vm2, %v1839_v35, 0.0  ;;  %v988_v45 = vpop.permute.xlu1 %987 }
 0x35b   :  { %1844 = vpow2.f32 %v793_v36  ;;  %808 = vadd.xlane.f32.xlu1 %v807_v38  ;;  %1741 = vmatpush3.msra.mxu1 %v912_v37 }
 0x35c   :  { %1750 = vmatprep.subr.mxu1 %v1886_v22 }
 0x35d   :  { %v1841_v39 = vpop.eup %1840 }
 0x35e   :  { %v810_v40 = vsel %vm140_vm2, %v1841_v39, 0.0  ;;  %v1064_v46 = vpop.permute.xlu1 %1063 }
 0x35f   :  { %811 = vadd.xlane.f32.xlu0 %v810_v40 }
 0x361   :  { %v2093_v41 = vpop.eup %1842 }
 0x362   :  { %v813_v42 = vsel %vm140_vm2, %v2093_v41, 0.0  ;;  %v1216_v47 = vpop.permute.xlu1 %1215 }
 0x363   :  { %814 = vadd.xlane.f32.xlu1 %v813_v42 }
 0x365   :  { %v2097_v43 = vpop.eup %1844 }
 0x366   :  { %v816_v44 = vsel %vm140_vm2, %v2097_v43, 0.0 }
 0x367   :  { %817 = vadd.xlane.f32.xlu0 %v816_v44 }
 0x374   :  { %1367 = vrot.lane.b32.xlu1 %v2007_v31, %s1892_s24  ;;  %v1140_v31 = vpop.permute.xlu0 %1139 }
 0x37d   :  { %1291 = vrot.lane.b32.xlu0 %v2003_v30, %s1892_s24 }
 0x393   :  { %v797_v48 = vpop.xlane.xlu1 %796 }
 0x394   :  { %1846 = vrcp.f32 %v797_v48 }
 0x39e   :  { %v1847_v49 = vpop.eup %1846 }
 0x39f   :  { %v820_v50 = vmul.f32 %v1847_v49, %v2079_v3 }
 0x3a1   :  { %1738 = vmatmul.mubr.msk.f32.vlgmr.msra.gmra.mrb[2].mxu0 %vm140_vm2, %v820_v50 }
 0x3a2   :  { %1746 = vmatpush3.msra.mxu0 %v988_v45  ;;  %1747 = vmatprep.mubr.msk.f32.mxu0 %vm1889_vm1, %v1886_v22  ;;  %v1613_v45 = vld [vmem:[%s2173_s4] ss:$0 sm:$0xff] }
 0x3a3   :  { %1755 = vmatprep.subr.mxu0 %v1886_v22 }
 0x3dc   :  { %v800_v51 = vpop.xlane.xlu0 %799 }
 0x3dd   :  { %1848 = vrcp.f32 %v800_v51 }
 0x3e0   :  { %v803_v30 = vpop.xlane.xlu1 %802 }
 0x3e1   :  { %1850 = vrcp.f32 %v803_v30 }
 0x3e4   :  { %v806_v52 = vpop.xlane.xlu0 %805 }
 0x3e5   :  { %1852 = vrcp.f32 %v806_v52 }
 0x3e7   :  { %v1849_v53 = vpop.eup %1848 }
 0x3e8   :  { %v822_v54 = vmul.f32 %v1849_v53, %v1833_v16  ;;  %v809_v55 = vpop.xlane.xlu1 %808 }
 0x3e9   :  { %1854 = vrcp.f32 %v809_v55 }
 0x3ea   :  { %1743 = vmatmul.mubr.msk.f32.vlgmr.msra.gmra.mrb[16].mxu1 %vm140_vm2, %v822_v54 }
 0x3eb   :  { %v1851_v56 = vpop.eup %1850  ;;  %1751 = vmatpush3.msra.mxu1 %v1064_v46  ;;  %1752 = vmatprep.mubr.msk.f32.mxu1 %vm1889_vm1, %v1886_v22 }
 0x3ec   :  { %v824_v57 = vmul.f32 %v1851_v56, %v1835_v21  ;;  %v812_v58 = vpop.xlane.xlu0 %811  ;;  %1760 = vmatprep.subr.mxu1 %v1886_v22 }
 0x3ed   :  { %1856 = vrcp.f32 %v812_v58 }
 0x3ee   :  { %1748 = vmatmul.mubr.msk.f32.vlgmr.msra.gmra.mrb[4].mxu0 %vm140_vm2, %v824_v57 }
 0x3ef   :  { %v1853_v59 = vpop.eup %1852  ;;  %1756 = vmatpush3.msra.mxu0 %v1140_v31  ;;  %1757 = vmatprep.mubr.msk.f32.mxu0 %vm1889_vm1, %v1886_v22 }
 0x3f0   :  { %v826_v60 = vmul.f32 %v1853_v59, %v2085_v27  ;;  %v815_v61 = vpop.xlane.xlu1 %814  ;;  %1765 = vmatprep.subr.mxu0 %v1886_v22 }
 0x3f1   :  { %1858 = vrcp.f32 %v815_v61 }
 0x3f2   :  { %1753 = vmatmul.mubr.msk.f32.vlgmr.msra.gmra.mrb[18].mxu1 %vm140_vm2, %v826_v60 }
 0x3f3   :  { %v1855_v62 = vpop.eup %1854  ;;  %1761 = vmatpush3.msra.mxu1 %v1216_v47  ;;  %1762 = vmatprep.mubr.msk.f32.mxu1 %vm1889_vm1, %v1886_v22 }
 0x3f4   :  { %v828_v63 = vmul.f32 %v1855_v62, %v1839_v35  ;;  %v818_v0 = vpop.xlane.xlu0 %817  ;;  %1770 = vmatprep.subr.mxu1 %v1886_v22  ;;  %v1368_v4 = vpop.permute.xlu1 %1367 }
 0x3f5   :  { %1860 = vrcp.f32 %v818_v0 }
 0x3f6   :  { %1758 = vmatmul.mubr.msk.f32.vlgmr.msra.gmra.mrb[6].mxu0 %vm140_vm2, %v828_v63 }
 0x3f7   :  { %v1857_v1 = vpop.eup %1856  ;;  %1767 = vmatprep.mubr.msk.f32.mxu0 %vm1889_vm1, %v1886_v22 }
 0x3f8   :  { %v830_v2 = vmul.f32 %v1857_v1, %v1841_v39  ;;  %v1292_v3 = vpop.permute.xlu0 %1291 }
 0x3f9   :  { %1766 = vmatpush3.msra.mxu0 %v1292_v3 }
 0x3fa   :  { %1763 = vmatmul.mubr.msk.f32.vlgmr.msra.gmra.mrb[20].mxu1 %vm140_vm2, %v830_v2 }
 0x3fb   :  { %v1859_v5 = vpop.eup %1858  ;;  %1771 = vmatpush3.msra.mxu1 %v1368_v4  ;;  %1772 = vmatprep.mubr.msk.f32.mxu1 %vm1889_vm1, %v1886_v22  ;;  %v1475_v22 = vld [vmem:[%s2172_s3] sm:$0xff] }
 0x3fc   :  { %v832_v6 = vmul.f32 %v1859_v5, %v2093_v41  ;;  %v1810_v15 = vpack.c.bf16 %v1476_v13, %v1475_v22 }
 0x3fe   :  { %1768 = vmatmul.mubr.msk.f32.vlgmr.msra.gmra.mrb[8].mxu0 %vm140_vm2, %v832_v6  ;;  %1811 = vmatprep.subr.bf16.mxu0 %v1810_v15 }
 0x3ff   :  { %v1861_v7 = vpop.eup %1860  ;;  %1813 = vmatpush3.bf16.msra.mxu0 %v1810_v15 }
 0x400   :  { %v834_v8 = vmul.f32 %v1861_v7, %v2097_v43  ;;  %1815 = vmatprep.subr.bf16.mxu0 %v1814_v20 }
 0x402   :  { %1773 = vmatmul.mubr.msk.f32.vlgmr.msra.gmra.mrb[22].mxu1 %vm140_vm2, %v834_v8 }
 0x403   :  { %1817 = vmatpush3.bf16.msra.mxu0 %v1814_v20 }
 0x474   :  { %v907_v9 = vpop.f32.mrb[2].mxu0 }
 0x475   :  { %v1739_v10 = vpop.f32.mrb[3].mxu0 }
 0x4bd   :  { %v983_v11 = vpop.f32.mrb[16].mxu1 }
 0x4be   :  { %1444 = vrot.lane.b32.xlu0 %v983_v11, %s1893_s25  ;;  %v1744_v12 = vpop.f32.mrb[17].mxu1 }
 0x4c1   :  { %v1059_v14 = vpop.f32.mrb[4].mxu0 }
 0x4c2   :  { %1448 = vrot.lane.b32.xlu1 %v1059_v14, %s1894_s30  ;;  %v1749_v16 = vpop.f32.mrb[5].mxu0 }
 0x4c5   :  { %v1135_v19 = vpop.f32.mrb[18].mxu1 }
 0x4c6   :  { %1452 = vrot.lane.b32.xlu1 %v1135_v19, %s1895_s10  ;;  %v1754_v21 = vpop.f32.mrb[19].mxu1 }
 0x4c9   :  { %v1211_v23 = vpop.f32.mrb[6].mxu0 }
 0x4ca   :  { %v1759_v24 = vpop.f32.mrb[7].mxu0 }
 0x4cd   :  { %v1287_v25 = vpop.f32.mrb[20].mxu1 }
 0x4ce   :  { %1461 = vrot.lane.b32.xlu0 %v1287_v25, %s1893_s25  ;;  %v1764_v26 = vpop.f32.mrb[21].mxu1 }
 0x4d1   :  { %v1363_v27 = vpop.f32.mrb[8].mxu0 }
 0x4d2   :  { %1465 = vrot.lane.b32.xlu0 %v1363_v27, %s1894_s30  ;;  %v1769_v28 = vpop.f32.mrb[9].mxu0 }
 0x4d5   :  { %v1439_v29 = vpop.f32.mrb[22].mxu1 }
 0x4d6   :  { %1469 = vrot.lane.b32.xlu1 %v1439_v29, %s1895_s10  ;;  %v1774_v32 = vpop.f32.mrb[23].mxu1 }
 0x530   :  { %v1445_v33 = vpop.permute.xlu0 %1444 }
 0x531   :  { %v1455_v35 = vsel %vm140_vm2, %v907_v9, %v1445_v33 }
 0x534   :  { %v1449_v34 = vpop.permute.xlu1 %1448 }
 0x535   :  { %v1457_v36 = vsel %vm1456_vm3, %v1455_v35, %v1449_v34 }
 0x538   :  { %v1453_v37 = vpop.permute.xlu1 %1452 }
 0x539   :  { %v1459_v38 = vsel %vm1458_vm4, %v1457_v36, %v1453_v37 }
 0x53a   :  { %1783 = vmatprep.mubr.msk.f32.mxu0 %vm1486_vm5, %v1459_v38 }
 0x540   :  { %v1462_v39 = vpop.permute.xlu0 %1461 }
 0x541   :  { %v1472_v41 = vsel %vm140_vm2, %v1211_v23, %v1462_v39 }
 0x544   :  { %v1466_v40 = vpop.permute.xlu0 %1465 }
 0x545   :  { %v1473_v42 = vsel %vm1456_vm3, %v1472_v41, %v1466_v40 }
 0x548   :  { %v1470_v43 = vpop.permute.xlu1 %1469 }
 0x549   :  { %v1474_v44 = vsel %vm1458_vm4, %v1473_v42, %v1470_v43 }
 0x54a   :  { %1784 = vmatmul.mubr.msk.f32.vlgmr.msra.gmra.mrb[10].mxu0 %vm1486_vm5, %v1474_v44 }
 0x61d   :  { %v1785_v46 = vpop.f32.mrb[10].mxu0 }
 0x61e   :  { %v1565_v47 = vadd.f32 %v1785_v46, %v1613_v45  ;;  %v1559_v48 = vpop.f32.mrb[11].mxu0 }
 0x61f   :  { %v1560_v49 = vadd.f32 %v1613_v45, %v1559_v48 }
 0x620   :  { %1569 = vst.msk [vmem:[#allocation2 + $0x8] sm:$0xff] %vm1486_vm5, %v1565_v47 }
 0x621   :  { %1568 = vst.msk [vmem:[#allocation2] sm:$0xff] %vm1486_vm5, %v1560_v49 }
 0x622   :  { %1873 = shalt.err (!%p1870_p4)
}
 0x623   :  { %s1874_s16 = scalar_lea.hbm %s2174_s5, 256 }
 0x624   :  { %p1875_p5 = scmp.ne.s32.totalorder %s2174_s5, %s1874_s16  ;;  %p1878_p6 = scmp.lt.u32.totalorder %s1874_s16, %s2174_s5 }
 0x626   :  { %p1880_p7 = pnand %p1878_p6, %p1875_p5 }
 0x628   :  { %1883 = shalt.err (!%p1880_p7)
}
 0x629   :  { %s1897_s21 = smov 128  }
 0x62a   :  { %1581 = dma.vmem_to_hbm [thread:$0]  %s1576_s13, 256, %s2174_s5, [#allocation3], %s1897_s21, %s1897_s21, %s1893_s25  }
 0x62b   :  { %1884 = dma.done.wait [#allocation3], 256  }
 0x62c   :  { %1885 = vsyncadd [#allocation3], 4294967040 }
 0x62d   :  { %1585 = vsyncpa [#allocation3], 1 }

</bundles_post_ra>
